<compile_context>
chip_gen: v5e
topology: v5e:2x2
jax: 0.10.0
libtpu: 0.0.40
codegen_flags: <defaults>
</compile_context>

<pallas_src>
import jax
import jax.numpy as jnp
from jax.experimental import pallas as pl
from jax.experimental.pallas import tpu as pltpu

_LANE = 128


def _odef_kernel(c_ref, x_ref, o_ref):
    # c_ref : SMEM f32[16] packed constants
    #   [0:2]   x0                      (x0_0, x0_1)
    #   [2:6]   B.T   row-major flat    (Bt00, Bt01, Bt10, Bt11)
    #   [6:10]  M = A.T - B.T flat      (M00,  M01,  M10,  M11 )
    #   [10:12] c_b  = x0 @ B.T
    #   [12:14] c_ab = x0 @ A.T + x0 @ B.T
    #   [14:16] padding
    # x_ref : VMEM f32[2, Bt]  -- batch on lanes, D=2 on sublanes
    # o_ref : VMEM f32[2, Bt]
    xr0 = x_ref[0:1, :]                       # (1, Bt)  feature 0 of every batch elem
    xr1 = x_ref[1:2, :]                       # (1, Bt)  feature 1

    # xTx0 = sum_k x[:,k] * x0[k]   (per-lane scalar)
    z = c_ref[0] * xr0 + c_ref[1] * xr1       # (1, Bt)
    s = jax.nn.sigmoid(z)                     # EUP; exact (keeps 1e-5 tolerance)

    # y_b = x @ B.T  and  y_m = x @ M, expressed in the transposed layout:
    #   out_row_j = W[0, j] * x_row0 + W[1, j] * x_row1     (pure VPU FMAs)
    yb0 = c_ref[2] * xr0 + c_ref[4] * xr1     # (x @ B.T) feature 0
    yb1 = c_ref[3] * xr0 + c_ref[5] * xr1     # (x @ B.T) feature 1
    ym0 = c_ref[6] * xr0 + c_ref[8] * xr1     # (x @ M)   feature 0
    ym1 = c_ref[7] * xr0 + c_ref[9] * xr1     # (x @ M)   feature 1

    # dxdt = x@B.T + c_b + s * (x@M - (c_a + c_b))
    out0 = yb0 + c_ref[10] + s * (ym0 - c_ref[12])
    out1 = yb1 + c_ref[11] + s * (ym1 - c_ref[13])

    o_ref[...] = jnp.concatenate([out0, out1], axis=0).astype(o_ref.dtype)


def test_odef_forward(x, t, A_w, B_w, x0, *, b_tile=None):
    """Pallas implementation of TestODEF.forward(x, t).  `t` is unused.

    x   : (B, 2) state
    A_w : (2, 2) nn.Linear A weight      (y = d @ A_w.T)
    B_w : (2, 2) nn.Linear B weight
    x0  : (1, 2) parameter
    """
    del t  # forward() takes t but never reads it
    B, D = x.shape
    assert D == 2, "TestODEF is defined for 2-D state"

    f32 = jnp.float32
    At = A_w.astype(f32).T                    # (2, 2)
    Bt = B_w.astype(f32).T                    # (2, 2)
    M = At - Bt                               # (2, 2)
    c_a = (x0.astype(f32) @ At).reshape(-1)   # (2,)
    c_b = (x0.astype(f32) @ Bt).reshape(-1)   # (2,)
    c_ab = c_a + c_b                          # (2,)

    # Single packed SMEM operand (2 kernel inputs instead of 4).
    consts = jnp.concatenate([
        x0.astype(f32).reshape(-1),           # [0:2]
        Bt.reshape(-1),                       # [2:6]
        M.reshape(-1),                        # [6:10]
        c_b,                                  # [10:12]
        c_ab,                                 # [12:14]
        jnp.zeros((2,), f32),                 # [14:16] pad to 16
    ])

    # Lane-dense layout: batch on the lane (last) axis.
    xT = x.astype(f32).T                      # (2, B)
    if b_tile is None:
        b_tile = min(512, ((B + _LANE - 1) // _LANE) * _LANE)
    padded_b = ((B + b_tile - 1) // b_tile) * b_tile
    if padded_b != B:
        xT = jnp.pad(xT, ((0, 0), (0, padded_b - B)))
    num_blocks = padded_b // b_tile

    outT = pl.pallas_call(
        _odef_kernel,
        out_shape=jax.ShapeDtypeStruct((2, padded_b), f32),
        grid=(num_blocks,),
        in_specs=[
            pl.BlockSpec(memory_space=pltpu.MemorySpace.SMEM),      # packed consts
            pl.BlockSpec((2, b_tile), lambda i: (0, i)),            # x (transposed)
        ],
        out_specs=pl.BlockSpec((2, b_tile), lambda i: (0, i)),
        compiler_params=pltpu.CompilerParams(
            dimension_semantics=("parallel",)),   # v7x: split batch over 2 TCs
    )(consts, xT)

    return outT[:, :B].T.astype(x.dtype)          # back to (B, 2)


def _reference(x, A_w, B_w, x0):
    xTx0 = jnp.sum(x * x0, axis=1, keepdims=True)
    return (jax.nn.sigmoid(xTx0) * ((x - x0) @ A_w.T)
            + jax.nn.sigmoid(-xTx0) * ((x + x0) @ B_w.T))


if __name__ == "__main__":
    key = jax.random.PRNGKey(0)
    k_x, k_x0 = jax.random.split(key)

    # Deterministic parameters (shapes from TestODEF.__init__: A, B are (2,2),
    # x0 is (1,2)) -- spiral-style dynamics matrices as in the original tutorial.
    A_w = jnp.array([[-0.1, -1.0],
                     [ 1.0, -0.1]], dtype=jnp.float32)
    B_w = jnp.array([[ 0.2,  1.0],
                     [-1.0,  0.2]], dtype=jnp.float32)
    x0 = jax.random.normal(k_x0, (1, 2), dtype=jnp.float32)

    # Small batch of states (keepdims per-row generalization of the B=1 case
    # the PyTorch module implies).
    batch = 4
    x = jax.random.normal(k_x, (batch, 2), dtype=jnp.float32)
    t = jnp.zeros((1, 1), dtype=jnp.float32)  # unused by forward()

    out = test_odef_forward(x, t, A_w, B_w, x0)
    out = jax.block_until_ready(out)

    ref = _reference(x, A_w, B_w, x0)
    assert out.shape == (batch, 2) and out.dtype == jnp.float32
    assert jnp.allclose(out, ref, atol=1e-5, rtol=1e-5)

    print("KERNEL_OK")
</pallas_src>

<mosaic_0001>
module attributes {stable_mosaic.version = 11 : i64} {
  func.func @_odef_kernel(%arg0: i32, %arg1: memref<16xf32, #tpu.memory_space<smem>>, %arg2: memref<2x128xf32, #tpu.memory_space<vmem>>, %arg3: memref<2x128xf32, #tpu.memory_space<vmem>>) attributes {dimension_semantics = [#tpu.dimension_semantics<parallel>], iteration_bounds = array<i64: 1>, scalar_prefetch = 0 : i64, scratch_operands = 0 : i64, tpu.core_type = #tpu.core_type<tc>, window_params = [{transform_indices = @transform_0, window_bounds = array<i64: 16>}, {transform_indices = @transform_1, window_bounds = array<i64: 2, 128>}, {transform_indices = @transform_2, window_bounds = array<i64: 2, 128>}]} {
    %c0 = arith.constant 0 : index
    %c0_0 = arith.constant 0 : index
    %0 = vector.load %arg2[%c0, %c0_0] : memref<2x128xf32, #tpu.memory_space<vmem>>, vector<1x128xf32>
    %c1 = arith.constant 1 : index
    %c0_1 = arith.constant 0 : index
    %1 = vector.load %arg2[%c1, %c0_1] : memref<2x128xf32, #tpu.memory_space<vmem>>, vector<1x128xf32>
    %c0_2 = arith.constant 0 : index
    %2 = memref.load %arg1[%c0_2] : memref<16xf32, #tpu.memory_space<smem>>
    %3 = vector.broadcast %2 : f32 to vector<1x128xf32>
    %4 = arith.mulf %3, %0 : vector<1x128xf32>
    %c1_3 = arith.constant 1 : index
    %5 = memref.load %arg1[%c1_3] : memref<16xf32, #tpu.memory_space<smem>>
    %6 = vector.broadcast %5 : f32 to vector<1x128xf32>
    %7 = arith.mulf %6, %1 : vector<1x128xf32>
    %8 = arith.addf %4, %7 : vector<1x128xf32>
    %9 = arith.negf %8 : vector<1x128xf32>
    %10 = math.exp %9 : vector<1x128xf32>
    %cst = arith.constant 1.000000e+00 : f32
    %11 = vector.broadcast %cst : f32 to vector<1x128xf32>
    %12 = arith.addf %11, %10 : vector<1x128xf32>
    %13 = arith.divf %11, %12 : vector<1x128xf32>
    %c2 = arith.constant 2 : index
    %14 = memref.load %arg1[%c2] : memref<16xf32, #tpu.memory_space<smem>>
    %15 = vector.broadcast %14 : f32 to vector<1x128xf32>
    %16 = arith.mulf %15, %0 : vector<1x128xf32>
    %c4 = arith.constant 4 : index
    %17 = memref.load %arg1[%c4] : memref<16xf32, #tpu.memory_space<smem>>
    %18 = vector.broadcast %17 : f32 to vector<1x128xf32>
    %19 = arith.mulf %18, %1 : vector<1x128xf32>
    %20 = arith.addf %16, %19 : vector<1x128xf32>
    %c3 = arith.constant 3 : index
    %21 = memref.load %arg1[%c3] : memref<16xf32, #tpu.memory_space<smem>>
    %22 = vector.broadcast %21 : f32 to vector<1x128xf32>
    %23 = arith.mulf %22, %0 : vector<1x128xf32>
    %c5 = arith.constant 5 : index
    %24 = memref.load %arg1[%c5] : memref<16xf32, #tpu.memory_space<smem>>
    %25 = vector.broadcast %24 : f32 to vector<1x128xf32>
    %26 = arith.mulf %25, %1 : vector<1x128xf32>
    %27 = arith.addf %23, %26 : vector<1x128xf32>
    %c6 = arith.constant 6 : index
    %28 = memref.load %arg1[%c6] : memref<16xf32, #tpu.memory_space<smem>>
    %29 = vector.broadcast %28 : f32 to vector<1x128xf32>
    %30 = arith.mulf %29, %0 : vector<1x128xf32>
    %c8 = arith.constant 8 : index
    %31 = memref.load %arg1[%c8] : memref<16xf32, #tpu.memory_space<smem>>
    %32 = vector.broadcast %31 : f32 to vector<1x128xf32>
    %33 = arith.mulf %32, %1 : vector<1x128xf32>
    %34 = arith.addf %30, %33 : vector<1x128xf32>
    %c7 = arith.constant 7 : index
    %35 = memref.load %arg1[%c7] : memref<16xf32, #tpu.memory_space<smem>>
    %36 = vector.broadcast %35 : f32 to vector<1x128xf32>
    %37 = arith.mulf %36, %0 : vector<1x128xf32>
    %c9 = arith.constant 9 : index
    %38 = memref.load %arg1[%c9] : memref<16xf32, #tpu.memory_space<smem>>
    %39 = vector.broadcast %38 : f32 to vector<1x128xf32>
    %40 = arith.mulf %39, %1 : vector<1x128xf32>
    %41 = arith.addf %37, %40 : vector<1x128xf32>
    %c10 = arith.constant 10 : index
    %42 = memref.load %arg1[%c10] : memref<16xf32, #tpu.memory_space<smem>>
    %43 = vector.broadcast %42 : f32 to vector<1x128xf32>
    %44 = arith.addf %20, %43 : vector<1x128xf32>
    %c12 = arith.constant 12 : index
    %45 = memref.load %arg1[%c12] : memref<16xf32, #tpu.memory_space<smem>>
    %46 = vector.broadcast %45 : f32 to vector<1x128xf32>
    %47 = arith.subf %34, %46 : vector<1x128xf32>
    %48 = arith.mulf %13, %47 : vector<1x128xf32>
    %49 = arith.addf %44, %48 : vector<1x128xf32>
    %c11 = arith.constant 11 : index
    %50 = memref.load %arg1[%c11] : memref<16xf32, #tpu.memory_space<smem>>
    %51 = vector.broadcast %50 : f32 to vector<1x128xf32>
    %52 = arith.addf %27, %51 : vector<1x128xf32>
    %c13 = arith.constant 13 : index
    %53 = memref.load %arg1[%c13] : memref<16xf32, #tpu.memory_space<smem>>
    %54 = vector.broadcast %53 : f32 to vector<1x128xf32>
    %55 = arith.subf %41, %54 : vector<1x128xf32>
    %56 = arith.mulf %13, %55 : vector<1x128xf32>
    %57 = arith.addf %52, %56 : vector<1x128xf32>
    %58 = tpu.concatenate %49, %57 in 0 : vector<1x128xf32>, vector<1x128xf32> -> vector<2x128xf32>
    %c0_4 = arith.constant 0 : index
    %c0_5 = arith.constant 0 : index
    %59 = vector.load %arg3[%c0_4, %c0_5] : memref<2x128xf32, #tpu.memory_space<vmem>>, vector<2x128xf32>
    tpu.vector_store %arg3[%c0_4, %c0_5], %58 {strides = array<i32>} : memref<2x128xf32, #tpu.memory_space<vmem>>, vector<2x128xf32>,
    return
  }
  func.func @transform_0(%arg0: i32) -> i32 {
    %c0_i32 = arith.constant 0 : i32
    %c0_i32_0 = arith.constant 0 : i32
    return %c0_i32 : i32
  }
  func.func @transform_1(%arg0: i32) -> (i32, i32) {
    %c0_i32 = arith.constant 0 : i32
    %c0_i32_0 = arith.constant 0 : i32
    return %c0_i32, %arg0 : i32, i32
  }
  func.func @transform_2(%arg0: i32) -> (i32, i32) {
    %c0_i32 = arith.constant 0 : i32
    %c0_i32_0 = arith.constant 0 : i32
    return %c0_i32, %arg0 : i32, i32
  }
}

</mosaic_0001>

<bundles_post_ra>
// kernel: tpu_custom_call.1
= control target key start
LH: loop header
LB: loop body
LE: loop exit
PB: predicated region body
PF: predicated region fallthrough
CT: control target
= control target key end

     0   :  { %7 = vsyncpa [#allocation5], 0  ;;  %s258_s0 = inlined_call_operand.hbm [shape: f32[16], index: 0, kind: input, shape index: {}]   ;;  %s259_s1 = inlined_call_operand.hbm [shape: f32[2,128], index: 1, kind: input, shape index: {}]   ;;  %s260_s2 = inlined_call_operand.hbm [shape: f32[2,128], index: 2, kind: output, shape index: {}]  }
   0x1   :  { %8 = vsyncpa [#allocation3], 0 }
   0x2   :  { %9 = vsyncpa [#allocation4], 0  ;;  %s15_s11 = sshll.u32 %s258_s0, 4  ;;  %s24_s14 = sshll.u32 %s259_s1, 4  ;;  %s16_s11 = int_to_ptr.hbm [resolvable:$true] %s15_s11  ;;  %s25_s14 = int_to_ptr.hbm [resolvable:$true] %s24_s14 }
   0x3   :  { %s222_s15 = smov [#allocation2]   ;;  %s223_s16 = smov [#allocation6]  }
   0x4   :  { %18 = dma.hbm_to_smem %s16_s11, 16, %s222_s15, [#allocation5]  }
   0x5   :  { %s26_s17 = sshll.u32 %s223_s16, 4  ;;  %s27_s17 = int_to_ptr.vmem [resolvable:$true] %s26_s17 }
   0x6   :  { %29 = dma.hbm_to_vmem [thread:$0]  %s25_s14, 32, %s27_s17, [#allocation3]  }
   0x7   :  { %216 = dma.done.wait [#allocation5], 16  }
   0x8   :  { %217 = vsyncadd [#allocation5], 4294967280 }
   0x9   :  { %218 = dma.done.wait [#allocation3], 32  }
   0xa   :  { %219 = vsyncadd [#allocation3], 4294967264 }
   0xb   :  { %38 = sfence }
   0xc   :  { %s41_s18 = sld [smem:[#allocation2]]  ;;  %v39_v0 = vld [vmem:[#allocation6] sm:$0x1]  ;;  %v40_v1 = vld [vmem:[#allocation6 + $0x1] sm:$0x1]  ;;  %s224_s30 = smov [#allocation7]  }
   0xd   :  { %s135_s19 = sld [smem:[#allocation2 + $0x1]]  ;;  %s122_s3 = sshll.u32 %s224_s30, 4  ;;  %vm114_vm4 = vcmask 1040384   ;;  %s123_s3 = int_to_ptr.vmem [resolvable:$true] %s122_s3 }
   0xe   :  { %s137_s0 = sld [smem:[#allocation2 + $0x2]]  ;;  %s124_s6 = sshll.u32 %s260_s2, 4  ;;  %s125_s6 = int_to_ptr.hbm [resolvable:$true] %s124_s6 }
   0xf   :  { %s138_s1 = sld [smem:[#allocation2 + $0x4]] }
  0x10   :  { %s141_s20 = sld [smem:[#allocation2 + $0x6]] }
  0x11   :  { %s142_s21 = sld [smem:[#allocation2 + $0x8]] }
  0x12   :  { %v42_v2 = vstv %s41_s18  ;;  %s143_s22 = sld [smem:[#allocation2 + $0x7]] }
  0x13   :  { %v43_v3 = vmul.f32 %v42_v2, %v39_v0  ;;  %v45_v4 = vstv %s135_s19  ;;  %s144_s23 = sld [smem:[#allocation2 + $0x9]] }
  0x14   :  { %v46_v5 = vmul.f32 %v45_v4, %v40_v1  ;;  %s139_s24 = sld [smem:[#allocation2 + $0x3]]  ;;  %v68_v14 = vstv %s137_s0 }
  0x15   :  { %s140_s25 = sld [smem:[#allocation2 + $0x5]]  ;;  %v71_v15 = vstv %s138_s1  ;;  %v69_v23 = vmul.f32 %v68_v14, %v39_v0 }
  0x16   :  { %v47_v6 = vadd.f32 %v46_v5, %v43_v3  ;;  %v82_v10 = vstv %s141_s20  ;;  %s246_s26 = sld [smem:[#allocation2 + $0xc]]  ;;  %v72_v25 = vmul.f32 %v71_v15, %v40_v1 }
  0x17   :  { %v85_v11 = vstv %s142_s21  ;;  %s248_s27 = sld [smem:[#allocation2 + $0xd]]  ;;  %v83_v18 = vmul.f32 %v82_v10, %v39_v0 }
  0x18   :  { %v136_v7 = vmul.f32 -1.442695, %v47_v6  ;;  %v89_v12 = vstv %s143_s22  ;;  %s250_s28 = sld [smem:[#allocation2 + $0xa]]  ;;  %v86_v19 = vmul.f32 %v85_v11, %v40_v1  ;;  %v73_v36 = vadd.f32 %v72_v25, %v69_v23 }
  0x19   :  { %v92_v13 = vstv %s144_s23  ;;  %v90_v20 = vmul.f32 %v89_v12, %v39_v0  ;;  %s147_s29 = sld [smem:[#allocation2 + $0xb]] }
  0x1a   :  { %152 = vpow2.f32 %v136_v7  ;;  %v75_v16 = vstv %s139_s24  ;;  %v93_v21 = vmul.f32 %v92_v13, %v40_v1  ;;  %v87_v29 = vadd.f32 %v86_v19, %v83_v18 }
  0x1b   :  { %v78_v17 = vstv %s140_s25  ;;  %v76_v26 = vmul.f32 %v75_v16, %v39_v0 }
  0x1c   :  { %v79_v27 = vmul.f32 %v78_v17, %v40_v1  ;;  %v94_v30 = vadd.f32 %v93_v21, %v90_v20  ;;  %v99_v33 = vstv %s246_s26 }
  0x1d   :  { %v107_v34 = vstv %s248_s27  ;;  %v100_v42 = vsub.f32 %v87_v29, %v99_v33 }
  0x1e   :  { %v80_v37 = vadd.f32 %v79_v27, %v76_v26  ;;  %v96_v39 = vstv %s250_s28  ;;  %v108_v43 = vsub.f32 %v94_v30, %v107_v34 }
  0x1f   :  { %v104_v40 = vstv %s147_s29  ;;  %v97_v45 = vadd.f32 %v96_v39, %v73_v36 }
  0x20   :  { %v153_v8 = vpop.eup %152  ;;  %v105_v46 = vadd.f32 %v104_v40, %v80_v37 }
  0x21   :  { %v51_v9 = vadd.f32 1.0, %v153_v8 }
  0x23   :  { %154 = vrcp.f32 %v51_v9  ;;  %v63_v28 = vand.u32 2147483648, %v51_v9  ;;  %vm57_vm0 = vweird.f32 %v51_v9  ;;  %v61_v32 = vand.u32 2147483647, %v51_v9 }
  0x25   :  { %v64_v38 = vor.u32 1.1754944e-38, %v63_v28  ;;  %vm62_vm3 = vcmp.eq.f32.partialorder %v61_v32, 8.507059e+37 }
  0x29   :  { %v155_v22 = vpop.eup %154 }
  0x2a   :  { %v53_v24 = vmul.f32 %v155_v22, %v51_v9  ;;  %vm58_vm1 = vweird.f32 %v155_v22 }
  0x2b   :  { %vm59_vm2 = vmor %vm57_vm0, %vm58_vm1 }
  0x2c   :  { %v54_v31 = vsub.f32 1.0, %v53_v24 }
  0x2e   :  { %v55_v35 = vmul.f32 %v155_v22, %v54_v31 }
  0x30   :  { %v56_v41 = vadd.f32 %v155_v22, %v55_v35 }
  0x32   :  { %v60_v44 = vsel %vm59_vm2, %v155_v22, %v56_v41 }
  0x33   :  { %v65_v47 = vsel %vm62_vm3, %v64_v38, %v60_v44 }
  0x34   :  { %v101_v48 = vmul.f32 %v100_v42, %v65_v47  ;;  %v109_v49 = vmul.f32 %v108_v43, %v65_v47 }
  0x36   :  { %v102_v50 = vadd.f32 %v101_v48, %v97_v45  ;;  %v110_v51 = vadd.f32 %v109_v49, %v105_v46 }
  0x38   :  { %v112_v52 = vrot.slane %v110_v51, 7 }
  0x3a   :  { %v115_v53 = vsel %vm114_vm4, %v102_v50, %v112_v52 }
  0x3b   :  { %116 = vst [vmem:[#allocation7] sm:$0x3] %v115_v53 }
  0x3c   :  { %127 = dma.vmem_to_hbm [thread:$0]  %s123_s3, 32, %s125_s6, [#allocation4]  }
  0x3d   :  { %220 = dma.done.wait [#allocation4], 32  }
  0x3e   :  { %221 = vsyncadd [#allocation4], 4294967264 }
  0x3f   :  { %132 = vsyncpa [#allocation3], 1 }
  0x40   :  { %133 = vsyncpa [#allocation4], 1 }
  0x41   :  { %134 = vsyncpa [#allocation5], 1 }

</bundles_post_ra>
